<compile_context>
chip_gen: v5e
topology: v5e:2x2
jax: 0.10.0
libtpu: 0.0.40
codegen_flags: <defaults>
</compile_context>

<pallas_src>
import functools

import jax
import jax.numpy as jnp
from jax.experimental import pallas as pl
from jax.experimental.pallas import tpu as pltpu

LN_EPS = 1e-5  # torch.nn.LayerNorm default


def _round_up(x, m):
    return (x + m - 1) // m * m


def _conv_relu_norm_kernel(x_ref, h_ref, w_ref, p_ref, o_ref, *, K, tile_T, inv_n, mm_dtype):
    """One (batch element, time tile) grid step.

    x_ref : (tile_T, C_in_p)       non-overlapping input tile, channels last
    h_ref : (HALO, C_in_p)         first K-1 (padded to 8) rows of the *next* tile
    w_ref : (K, C_in_p, C_out_p)   conv weight, one (C_in_p, C_out_p) slice per tap
    p_ref : (4, C_out_p)           rows = [bias, gamma, beta, channel_mask]  (float32)
    o_ref : (tile_T, C_out_p)      output tile (lane-dense)
    """
    xm = x_ref[...]
    if K > 1:
        window = jnp.concatenate([xm, h_ref[...]], axis=0)     # (tile_T + HALO, C_in_p)
    else:
        window = xm
    if mm_dtype is not None:
        window = window.astype(mm_dtype)                       # in-kernel cast, hides under MXU

    # ---- Conv1d: K accumulating MXU matmuls, f32 accumulation -----------------------
    acc = jnp.dot(window[0:tile_T], w_ref[0], preferred_element_type=jnp.float32)
    for k in range(1, K):
        acc = acc + jnp.dot(window[k:k + tile_T], w_ref[k],
                            preferred_element_type=jnp.float32)

    bias = p_ref[0:1, :]
    gamma = p_ref[1:2, :]
    beta = p_ref[2:3, :]
    mask = p_ref[3:4, :]

    # ---- bias + ReLU; zero padded channels so LayerNorm stats are exact -------------
    acc = jnp.maximum(acc + bias, 0.0) * mask

    # ---- LayerNorm over the real channels only (f32 math) ---------------------------
    mean = jnp.sum(acc, axis=-1, keepdims=True) * inv_n
    centered = (acc - mean) * mask
    var = jnp.sum(centered * centered, axis=-1, keepdims=True) * inv_n
    normed = centered * jax.lax.rsqrt(var + LN_EPS) * gamma + beta

    # Dropout: inference identity (module default dropout=0.0).
    o_ref[...] = normed.astype(o_ref.dtype)


def conv_relu_norm(signal, weight, bias, gamma, beta, *, kernel_size,
                   tile_t=1024, matmul_dtype=None):
    """Forward pass matching ConvReLUNorm.forward (inference mode).

    signal: (B, C_in, T)       PyTorch NCT layout
    weight: (C_out, C_in, K)   torch Conv1d weight layout
    bias, gamma, beta: (C_out,)
    tile_t: target time-tile length (rounded to a multiple of 8, shrunk to fit VMEM).
    matmul_dtype: optional narrow dtype (e.g. jnp.bfloat16) for the conv matmul operands;
                  the cast happens in-kernel, accumulation and LayerNorm stay float32.
    returns: (B, C_out, T_out) with T_out = T + 2*(K//2) - K + 1
    """
    B, C_in, T = signal.shape
    C_out, _, K = weight.shape
    assert K == kernel_size
    pad = K // 2
    T_out = T + 2 * pad - (K - 1)

    C_in_p = _round_up(C_in, 128)            # lane-dense input channels
    C_out_p = _round_up(C_out, 128)          # lane-dense output channels
    HALO = max(8, _round_up(K - 1, 8))       # halo rows carried in the tiny side-array

    mm_dtype = None if matmul_dtype is None else jnp.dtype(matmul_dtype)
    x_item = jnp.dtype(signal.dtype).itemsize
    o_item = x_item
    w_item = 4 if mm_dtype is None else mm_dtype.itemsize
    mm_item = w_item

    def vmem_need(tT):
        # everything the pipeline double-buffers ...
        in_b = tT * C_in_p * x_item
        halo_b = HALO * C_in_p * x_item
        out_b = tT * C_out_p * o_item
        w_b = K * C_in_p * C_out_p * w_item
        p_b = 4 * C_out_p * 4
        # ... plus single-buffered in-kernel temporaries
        scratch = ((tT + HALO) * C_in_p * mm_item             # halo'd window
                   + max(K - 1, 1) * tT * C_in_p * mm_item    # shifted tap views
                   + 3 * tT * C_out_p * 4)                    # acc / centered / normed (f32)
        return 2 * (in_b + halo_b + out_b + w_b + p_b) + scratch

    # ---- tile selection ---------------------------------------------------------------
    tile_T = min(_round_up(T_out, 8), _round_up(max(tile_t, 8), 8))
    # keep >= 2 grid steps overall so both v7x TensorCores get work (v5e/v6e: harmless)
    if B * pl.cdiv(T_out, tile_T) < 2 and T_out > 8:
        tile_T = _round_up(pl.cdiv(T_out, 2), 8)
    VMEM_BUDGET = 32 * 1024 * 1024           # v7x-safe (64 MiB physical per TensorCore)
    while vmem_need(tile_T) > int(0.9 * VMEM_BUDGET) and tile_T > 8:
        tile_T = max(8, _round_up(tile_T // 2, 8))

    n_tiles = pl.cdiv(T_out, tile_T)
    T_out_p = n_tiles * tile_T

    # ---- wrapper glue (layout only): NCT -> NTC, zero-pad channels/time ----------------
    x = jnp.transpose(signal, (0, 2, 1))                                 # (B, T, C_in)
    t_total = T_out_p + HALO
    x = jnp.pad(x, ((0, 0), (pad, t_total - (T + pad)), (0, C_in_p - C_in)))

    # tiny per-tile halo side-array: first HALO rows of the *next* tile (~HALO/tile_T traffic)
    if K > 1:
        halo = jnp.stack(
            [x[:, (j + 1) * tile_T:(j + 1) * tile_T + HALO, :] for j in range(n_tiles)],
            axis=1)                                                      # (B, n_tiles, HALO, C_in_p)
    else:
        halo = jnp.zeros((B, n_tiles, HALO, C_in_p), x.dtype)

    w = jnp.transpose(weight, (2, 1, 0))                                 # (K, C_in, C_out)
    w = jnp.pad(w, ((0, 0), (0, C_in_p - C_in), (0, C_out_p - C_out)))
    if mm_dtype is not None:
        w = w.astype(mm_dtype)                                           # tiny, one-off cast

    params = jnp.zeros((4, C_out_p), jnp.float32)
    params = params.at[0, :C_out].set(bias.astype(jnp.float32))
    params = params.at[1, :C_out].set(gamma.astype(jnp.float32))
    params = params.at[2, :C_out].set(beta.astype(jnp.float32))
    params = params.at[3, :C_out].set(1.0)                               # real-channel mask

    need = vmem_need(tile_T)
    vmem_limit = int(min(VMEM_BUDGET, max(16 * 1024 * 1024, int(1.25 * need))))

    cost = pl.CostEstimate(
        flops=2 * B * T_out * K * C_in * C_out,
        transcendentals=0,
        bytes_accessed=(B * t_total * C_in_p * x_item
                        + B * n_tiles * HALO * C_in_p * x_item
                        + K * C_in_p * C_out_p * w_item
                        + B * T_out_p * C_out_p * o_item),
    )

    kernel = functools.partial(_conv_relu_norm_kernel, K=K, tile_T=tile_T,
                               inv_n=1.0 / C_out, mm_dtype=mm_dtype)

    out_padded = pl.pallas_call(
        kernel,
        out_shape=jax.ShapeDtypeStruct((B, T_out_p, C_out_p), signal.dtype),
        grid_spec=pltpu.PrefetchScalarGridSpec(
            num_scalar_prefetch=0,
            grid=(B, n_tiles),
            in_specs=[
                pl.BlockSpec((None, tile_T, C_in_p), lambda b, j: (b, j, 0)),
                pl.BlockSpec((None, None, HALO, C_in_p), lambda b, j: (b, j, 0, 0)),
                pl.BlockSpec((K, C_in_p, C_out_p), lambda b, j: (0, 0, 0)),
                pl.BlockSpec((4, C_out_p), lambda b, j: (0, 0)),
            ],
            out_specs=pl.BlockSpec((None, tile_T, C_out_p), lambda b, j: (b, j, 0)),
        ),
        compiler_params=pltpu.CompilerParams(
            dimension_semantics=("parallel", "parallel"),
            vmem_limit_bytes=vmem_limit,
        ),
        cost_estimate=cost,
    )(x, halo, w, params)

    out = out_padded[:, :T_out, :C_out]
    return jnp.transpose(out, (0, 2, 1))                                 # (B, C_out, T_out)


def _reference(signal, weight, bias, gamma, beta):
    """Pure-JAX reference mirroring the PyTorch module (for verification)."""
    K = weight.shape[-1]
    pad = K // 2
    out = jax.lax.conv_general_dilated(
        signal, weight,
        window_strides=(1,), padding=[(pad, pad)],
        dimension_numbers=("NCH", "OIH", "NCH"),
    ) + bias[None, :, None]
    out = jnp.maximum(out, 0.0)
    out_t = jnp.transpose(out, (0, 2, 1))                                # (B, T, C_out)
    mean = jnp.mean(out_t, axis=-1, keepdims=True)
    var = jnp.mean((out_t - mean) ** 2, axis=-1, keepdims=True)
    normed = (out_t - mean) / jnp.sqrt(var + LN_EPS) * gamma + beta
    return jnp.transpose(normed, (0, 2, 1))


if __name__ == "__main__":
    key = jax.random.PRNGKey(0)

    def make_params(k, C_in, C_out, K):
        k_w, k_b, k_g, k_be = jax.random.split(k, 4)
        fan_in = C_in * K
        weight = jax.random.uniform(
            k_w, (C_out, C_in, K), minval=-1.0, maxval=1.0, dtype=jnp.float32
        ) / jnp.sqrt(fan_in)
        bias = jax.random.uniform(
            k_b, (C_out,), minval=-1.0, maxval=1.0, dtype=jnp.float32
        ) / jnp.sqrt(fan_in)
        gamma = 1.0 + 0.1 * jax.random.normal(k_g, (C_out,), dtype=jnp.float32)
        beta = 0.1 * jax.random.normal(k_be, (C_out,), dtype=jnp.float32)
        return weight, bias, gamma, beta

    # ---- check 1: f32 path, single time tile -----------------------------------------
    B, C_in, C_out, T, K = 2, 16, 32, 24, 3
    k_sig, k_par, key = jax.random.split(key, 3)
    signal = jax.random.normal(k_sig, (B, C_in, T), dtype=jnp.float32)
    weight, bias, gamma, beta = make_params(k_par, C_in, C_out, K)
    out = jax.block_until_ready(
        conv_relu_norm(signal, weight, bias, gamma, beta, kernel_size=K))
    ref = _reference(signal, weight, bias, gamma, beta)
    assert out.shape == (B, C_out, T), out.shape
    err = float(jnp.max(jnp.abs(out - ref)))
    assert err < 1e-4, err

    # ---- check 2: bf16 matmul path, multiple time tiles (halo correctness) ------------
    B, C_in, C_out, T, K = 1, 24, 48, 80, 3
    k_sig, k_par, key = jax.random.split(key, 3)
    signal = jax.random.normal(k_sig, (B, C_in, T), dtype=jnp.float32)
    weight, bias, gamma, beta = make_params(k_par, C_in, C_out, K)
    out = jax.block_until_ready(
        conv_relu_norm(signal, weight, bias, gamma, beta, kernel_size=K,
                       tile_t=32, matmul_dtype=jnp.bfloat16))
    ref = _reference(signal, weight, bias, gamma, beta)
    assert out.shape == (B, C_out, T), out.shape
    err_bf16 = float(jnp.max(jnp.abs(out - ref)))
    assert err_bf16 < 1e-1, err_bf16

    # ---- check 3: default tile, B=1 -> grid auto-split into >=2 steps ------------------
    B, C_in, C_out, T, K = 1, 64, 96, 300, 3
    k_sig, k_par, key = jax.random.split(key, 3)
    signal = jax.random.normal(k_sig, (B, C_in, T), dtype=jnp.float32)
    weight, bias, gamma, beta = make_params(k_par, C_in, C_out, K)
    out = jax.block_until_ready(
        conv_relu_norm(signal, weight, bias, gamma, beta, kernel_size=K))
    ref = _reference(signal, weight, bias, gamma, beta)
    assert out.shape == (B, C_out, T), out.shape
    err3 = float(jnp.max(jnp.abs(out - ref)))
    assert err3 < 1e-3, err3

    print("KERNEL_OK")
</pallas_src>

<mosaic_0001>
module attributes {stable_mosaic.version = 11 : i64} {
  func.func @_conv_relu_norm_kernel(%arg0: i32, %arg1: i32, %arg2: memref<1x24x128xf32, #tpu.memory_space<vmem>>, %arg3: memref<1x1x8x128xf32, #tpu.memory_space<vmem>>, %arg4: memref<3x128x128xf32, #tpu.memory_space<vmem>>, %arg5: memref<4x128xf32, #tpu.memory_space<vmem>>, %arg6: memref<1x24x128xf32, #tpu.memory_space<vmem>>) attributes {dimension_semantics = [#tpu.dimension_semantics<parallel>, #tpu.dimension_semantics<parallel>], iteration_bounds = array<i64: 2, 1>, scalar_prefetch = 0 : i64, scratch_operands = 0 : i64, tpu.core_type = #tpu.core_type<tc>, window_params = [{transform_indices = @transform_0, window_bounds = array<i64: 1, 24, 128>}, {transform_indices = @transform_1, window_bounds = array<i64: 1, 1, 8, 128>}, {pipeline_mode = #tpu.pipeline_mode<synchronous>, transform_indices = @transform_2, window_bounds = array<i64: 3, 128, 128>}, {pipeline_mode = #tpu.pipeline_mode<synchronous>, transform_indices = @transform_3, window_bounds = array<i64: 4, 128>}, {transform_indices = @transform_4, window_bounds = array<i64: 1, 24, 128>}]} {
    %c0 = arith.constant 0 : index
    %c0_0 = arith.constant 0 : index
    %c0_1 = arith.constant 0 : index
    %0 = vector.load %arg2[%c0, %c0_0, %c0_1] : memref<1x24x128xf32, #tpu.memory_space<vmem>>, vector<1x24x128xf32>
    %1 = vector.shape_cast %0 : vector<1x24x128xf32> to vector<24x128xf32>
    %c0_2 = arith.constant 0 : index
    %c0_3 = arith.constant 0 : index
    %c0_4 = arith.constant 0 : index
    %c0_5 = arith.constant 0 : index
    %2 = vector.load %arg3[%c0_2, %c0_3, %c0_4, %c0_5] : memref<1x1x8x128xf32, #tpu.memory_space<vmem>>, vector<1x1x8x128xf32>
    %3 = vector.shape_cast %2 : vector<1x1x8x128xf32> to vector<8x128xf32>
    %4 = tpu.concatenate %1, %3 in 0 : vector<24x128xf32>, vector<8x128xf32> -> vector<32x128xf32>
    %5 = vector.extract_strided_slice %4 {offsets = [0, 0], sizes = [24, 128], strides = [1, 1]} : vector<32x128xf32> to vector<24x128xf32>
    %c0_6 = arith.constant 0 : index
    %c0_7 = arith.constant 0 : index
    %c0_8 = arith.constant 0 : index
    %6 = vector.load %arg4[%c0_6, %c0_7, %c0_8] : memref<3x128x128xf32, #tpu.memory_space<vmem>>, vector<1x128x128xf32>
    %7 = vector.shape_cast %6 : vector<1x128x128xf32> to vector<128x128xf32>
    %cst = arith.constant dense<0.000000e+00> : vector<24x128xf32>
    %8 = tpu.matmul %5, %7, %cst {dimension_numbers = #tpu.dot_dimension_numbers<[1], [0], [0], [1], [0, 0, 1, 1], [], []>} : vector<24x128xf32>, vector<128x128xf32>, vector<24x128xf32> -> vector<24x128xf32>
    %9 = vector.extract_strided_slice %4 {offsets = [1, 0], sizes = [24, 128], strides = [1, 1]} : vector<32x128xf32> to vector<24x128xf32>
    %c1 = arith.constant 1 : index
    %c0_9 = arith.constant 0 : index
    %c0_10 = arith.constant 0 : index
    %10 = vector.load %arg4[%c1, %c0_9, %c0_10] : memref<3x128x128xf32, #tpu.memory_space<vmem>>, vector<1x128x128xf32>
    %11 = vector.shape_cast %10 : vector<1x128x128xf32> to vector<128x128xf32>
    %cst_11 = arith.constant dense<0.000000e+00> : vector<24x128xf32>
    %12 = tpu.matmul %9, %11, %cst_11 {dimension_numbers = #tpu.dot_dimension_numbers<[1], [0], [0], [1], [0, 0, 1, 1], [], []>} : vector<24x128xf32>, vector<128x128xf32>, vector<24x128xf32> -> vector<24x128xf32>
    %13 = arith.addf %8, %12 : vector<24x128xf32>
    %14 = vector.extract_strided_slice %4 {offsets = [2, 0], sizes = [24, 128], strides = [1, 1]} : vector<32x128xf32> to vector<24x128xf32>
    %c2 = arith.constant 2 : index
    %c0_12 = arith.constant 0 : index
    %c0_13 = arith.constant 0 : index
    %15 = vector.load %arg4[%c2, %c0_12, %c0_13] : memref<3x128x128xf32, #tpu.memory_space<vmem>>, vector<1x128x128xf32>
    %16 = vector.shape_cast %15 : vector<1x128x128xf32> to vector<128x128xf32>
    %cst_14 = arith.constant dense<0.000000e+00> : vector<24x128xf32>
    %17 = tpu.matmul %14, %16, %cst_14 {dimension_numbers = #tpu.dot_dimension_numbers<[1], [0], [0], [1], [0, 0, 1, 1], [], []>} : vector<24x128xf32>, vector<128x128xf32>, vector<24x128xf32> -> vector<24x128xf32>
    %18 = arith.addf %13, %17 : vector<24x128xf32>
    %c0_15 = arith.constant 0 : index
    %c0_16 = arith.constant 0 : index
    %19 = vector.load %arg5[%c0_15, %c0_16] : memref<4x128xf32, #tpu.memory_space<vmem>>, vector<1x128xf32>
    %c1_17 = arith.constant 1 : index
    %c0_18 = arith.constant 0 : index
    %20 = vector.load %arg5[%c1_17, %c0_18] : memref<4x128xf32, #tpu.memory_space<vmem>>, vector<1x128xf32>
    %c2_19 = arith.constant 2 : index
    %c0_20 = arith.constant 0 : index
    %21 = vector.load %arg5[%c2_19, %c0_20] : memref<4x128xf32, #tpu.memory_space<vmem>>, vector<1x128xf32>
    %c3 = arith.constant 3 : index
    %c0_21 = arith.constant 0 : index
    %22 = vector.load %arg5[%c3, %c0_21] : memref<4x128xf32, #tpu.memory_space<vmem>>, vector<1x128xf32>
    %23 = vector.broadcast %19 : vector<1x128xf32> to vector<24x128xf32>
    %24 = arith.addf %18, %23 : vector<24x128xf32>
    %cst_22 = arith.constant 0.000000e+00 : f32
    %25 = vector.broadcast %cst_22 : f32 to vector<24x128xf32>
    %26 = arith.maximumf %24, %25 : vector<24x128xf32>
    %27 = vector.broadcast %22 : vector<1x128xf32> to vector<24x128xf32>
    %28 = arith.mulf %26, %27 : vector<24x128xf32>
    %cst_23 = arith.constant dense<0.000000e+00> : vector<24xf32>
    %29 = vector.multi_reduction <add>, %28, %cst_23 [1] : vector<24x128xf32> to vector<24xf32>
    %30 = vector.shape_cast %29 : vector<24xf32> to vector<24x1xf32>
    %cst_24 = arith.constant 3.125000e-02 : f32
    %31 = vector.broadcast %cst_24 : f32 to vector<24x1xf32>
    %32 = arith.mulf %30, %31 : vector<24x1xf32>
    %33 = vector.broadcast %32 : vector<24x1xf32> to vector<24x128xf32>
    %34 = arith.subf %28, %33 : vector<24x128xf32>
    %35 = vector.broadcast %22 : vector<1x128xf32> to vector<24x128xf32>
    %36 = arith.mulf %34, %35 : vector<24x128xf32>
    %37 = arith.mulf %36, %36 : vector<24x128xf32>
    %cst_25 = arith.constant dense<0.000000e+00> : vector<24xf32>
    %38 = vector.multi_reduction <add>, %37, %cst_25 [1] : vector<24x128xf32> to vector<24xf32>
    %39 = vector.shape_cast %38 : vector<24xf32> to vector<24x1xf32>
    %cst_26 = arith.constant 3.125000e-02 : f32
    %40 = vector.broadcast %cst_26 : f32 to vector<24x1xf32>
    %41 = arith.mulf %39, %40 : vector<24x1xf32>
    %cst_27 = arith.constant 9.99999974E-6 : f32
    %42 = vector.broadcast %cst_27 : f32 to vector<24x1xf32>
    %43 = arith.addf %41, %42 : vector<24x1xf32>
    %44 = math.rsqrt %43 : vector<24x1xf32>
    %45 = vector.broadcast %44 : vector<24x1xf32> to vector<24x128xf32>
    %46 = arith.mulf %36, %45 : vector<24x128xf32>
    %47 = vector.broadcast %20 : vector<1x128xf32> to vector<24x128xf32>
    %48 = arith.mulf %46, %47 : vector<24x128xf32>
    %49 = vector.broadcast %21 : vector<1x128xf32> to vector<24x128xf32>
    %50 = arith.addf %48, %49 : vector<24x128xf32>
    %c0_28 = arith.constant 0 : index
    %c0_29 = arith.constant 0 : index
    %c0_30 = arith.constant 0 : index
    %51 = vector.load %arg6[%c0_28, %c0_29, %c0_30] : memref<1x24x128xf32, #tpu.memory_space<vmem>>, vector<1x24x128xf32>
    %52 = vector.shape_cast %51 : vector<1x24x128xf32> to vector<24x128xf32>
    %53 = vector.shape_cast %50 : vector<24x128xf32> to vector<1x24x128xf32>
    tpu.vector_store %arg6[%c0_28, %c0_29, %c0_30], %53 {strides = array<i32>} : memref<1x24x128xf32, #tpu.memory_space<vmem>>, vector<1x24x128xf32>,
    return
  }
  func.func @transform_0(%arg0: i32, %arg1: i32) -> (i32, i32, i32) {
    %c0_i32 = arith.constant 0 : i32
    %c0_i32_0 = arith.constant 0 : i32
    return %arg0, %arg1, %c0_i32 : i32, i32, i32
  }
  func.func @transform_1(%arg0: i32, %arg1: i32) -> (i32, i32, i32, i32) {
    %c0_i32 = arith.constant 0 : i32
    %c0_i32_0 = arith.constant 0 : i32
    %c0_i32_1 = arith.constant 0 : i32
    return %arg0, %arg1, %c0_i32, %c0_i32_0 : i32, i32, i32, i32
  }
  func.func @transform_2(%arg0: i32, %arg1: i32) -> (i32, i32, i32) {
    %c0_i32 = arith.constant 0 : i32
    %c0_i32_0 = arith.constant 0 : i32
    %c0_i32_1 = arith.constant 0 : i32
    %c0_i32_2 = arith.constant 0 : i32
    return %c0_i32, %c0_i32_0, %c0_i32_1 : i32, i32, i32
  }
  func.func @transform_3(%arg0: i32, %arg1: i32) -> (i32, i32) {
    %c0_i32 = arith.constant 0 : i32
    %c0_i32_0 = arith.constant 0 : i32
    %c0_i32_1 = arith.constant 0 : i32
    return %c0_i32, %c0_i32_0 : i32, i32
  }
  func.func @transform_4(%arg0: i32, %arg1: i32) -> (i32, i32, i32) {
    %c0_i32 = arith.constant 0 : i32
    %c0_i32_0 = arith.constant 0 : i32
    return %arg0, %arg1, %c0_i32 : i32, i32, i32
  }
}

</mosaic_0001>

<bundles_post_ra>
// kernel: tpu_custom_call.1
= control target key start
LH: loop header
LB: loop body
LE: loop exit
PB: predicated region body
PF: predicated region fallthrough
CT: control target
= control target key end

     0   :  { %s1295_s0 = inlined_call_operand.hbm [shape: f32[2,32,128], index: 0, kind: input, shape index: {}]   ;;  %s1296_s1 = inlined_call_operand.hbm [shape: f32[2,1,8,128], index: 1, kind: input, shape index: {}]   ;;  %s1297_s2 = inlined_call_operand.hbm [shape: f32[3,128,128], index: 2, kind: input, shape index: {}]   ;;  %s1298_s3 = inlined_call_operand.hbm [shape: f32[4,128], index: 3, kind: input, shape index: {}]   ;;  %s1299_s4 = inlined_call_operand.hbm [shape: f32[2,24,128], index: 4, kind: output, shape index: {}]  }
   0x1   :  { %1304 = sst [smem:[#allocation19_spill]] %s1297_s2 }
   0x2   :  { %1305 = sst [smem:[#allocation20_spill]] %s1298_s3 }
   0x3   :  { %9 = vsyncpa [#allocation3], 0 }
   0x4   :  { %11 = vsyncpa [#allocation3 + $0x1], 0 }
   0x5   :  { %12 = vsyncpa [#allocation6], 0 }
   0x6   :  { %14 = vsyncpa [#allocation6 + $0x1], 0 }
   0x7   :  { %15 = vsyncpa [#allocation9], 0 }
   0x8   :  { %16 = vsyncpa [#allocation4], 0 }
   0x9   :  { %18 = vsyncpa [#allocation4 + $0x1], 0  ;;  %s1106_s15 = smov 0   ;;  %s1108_s16 = smov 0  }
   0xa   :  { %s1110_s17 = smov 0   ;;  %s1112_s18 = smov 0  }
   0xb   :  { %s1114_s19 = smov 0   ;;  %s1116_s20 = smov 0  }
   0xc LB: > { %1306 = sst [smem:[#allocation16_spill]] %s1061_s17  ;;  %s1137_s21 = sadd.s32 4294967295, %s1073_s20   ;;  %s1073_s20 = sphi %s1116_s20, %s24_s20   ;;  %s1069_s19 = sphi %s1114_s19, %s1324_s19   ;;  %s1065_s18 = sphi %s1112_s18, %s1323_s18   ;;  %s1061_s17 = sphi %s1110_s17, %s1319_s17   ;;  %s1057_s16 = sphi %s1108_s16, %s1322_s16   ;;  %s1053_s15 = sphi %s1106_s15, %s1321_s15  }
   0xd   : > { %s721_s22 = sadd.s32 4294967294, %s1073_s20   ;;  %p58_p0 = scmp.ne.s32.totalorder %s1057_s16, %s1053_s15 }
   0xe   : > { %p59_p1 = scmp.eq.s32.totalorder %s1137_s21, 0  ;;  %p154_p2 = scmp.eq.s32.totalorder %s1137_s21, 1 }
   0xf   : > { %p160_p3 = scmp.eq.s32.totalorder %s721_s22, 1  ;;  %p722_p5 = scmp.ge.s32.totalorder %s1073_s20, 1 }
  0x10   : > { %p1146_p4 = por %p59_p1, %p58_p0  ;;  %p167_p7 = scmp.lt.s32.totalorder %s1073_s20, 3 }
  0x11   : > { %p1151_p6 = por %p160_p3, %p58_p0  ;;  %s1309_s2 = sld [smem:[#allocation19_spill]] }
  0x12   : > { %p1159_p8 = pnand %p722_p5, %p167_p7  ;;  %s1075_s29 = smov [#allocation7]  }
  0x13   : > { %s180_s30 = sshll.u32 %s1075_s29, 4  ;;  %p725_p11 = scmp.ge.s32.totalorder %s1073_s20, 2  ;;  %s181_s30 = int_to_ptr.vmem [resolvable:$true] %s180_s30 }
  0x14   : > { %p771_p9 = pneg %p1159_p8  ;;  %s1311_s3 = sld [smem:[#allocation20_spill]] }
  0x15   : > { %s1300_s8 = smov 128   ;;  %s1301_s9 = smov 8  }
  0x16   : > { %p772_p10 = pnand %p771_p9, %p59_p1  ;;  %s1078_s10 = smov [#allocation8]  }
  0x17   : > { %s178_s27 = sshll.u32 %s1309_s2, 4  ;;  %s195_s11 = sshll.u32 %s1078_s10, 4  ;;  %s179_s27 = int_to_ptr.hbm [resolvable:$true] %s178_s27  ;;  %s196_s11 = int_to_ptr.vmem [resolvable:$true] %s195_s11 }
  0x18   : > { %774 = dma.hbm_to_vmem [thread:$0]  (!%p772_p10), %s179_s27, 6144, %s181_s30, [#allocation6], %s1300_s8, %s1300_s8, %s1301_s9  }
  0x19   : > { %s36_s12 = sadd.s32 1, %s1069_s19  ;;  %s45_s13 = sadd.s32 1, %s1061_s17 }
  0x1a   : > { %s193_s7 = sshll.u32 %s1311_s3, 4  ;;  %p38_p12 = scmp.ge.s32.totalorder %s36_s12, 2  ;;  %s194_s7 = int_to_ptr.hbm [resolvable:$true] %s193_s7 }
  0x1b   : > { %777 = dma.hbm_to_vmem [thread:$0]  (!%p772_p10), %s194_s7, 64, %s196_s11, [#allocation9]  }
  0x1c   : > { %p52_p13 = scmp.ne.s32.totalorder %s1061_s17, %s1057_s16  ;;  %p53_p0 = scmp.eq.s32.totalorder %s1073_s20, 0 }
  0x1d   : > { %p791_p3 = scmp.lt.s32.totalorder %s1073_s20, 2  ;;  %s1326_s12 = smov (%p38_p12, %s36_s12), 0 }
  0x1e   : > { %1312 = sst [smem:[#allocation17_spill]] %s1326_s12  ;;  %p1182_p5 = por %p53_p0, %p52_p13 }
  0x1f   : > { %p1188_p7 = por %p154_p2, %p52_p13  ;;  %s40_s25 = ssub.s32 %s1069_s19, %s1326_s12 }
  0x20   : > { %s206_s26 = sand.u32 1, %s1061_s17   ;;  %p43_p9 = scmp.eq.s32.totalorder %s40_s25, 0 }
  0x21   : > { %s754_s27 = smul.u32 24, %s206_s26  ;;  %s737_s29 = sshll.u32 %s1069_s19, 5 }
  0x22   : > { %s1197_s30 = scalar_select %p43_p9, %s1061_s17, %s45_s13  }
  0x23   : > { %s223_s7 = scalar_lea.hbm %s1295_s0, %s737_s29  ;;  %s210_s11 = scalar_lea.vmem [#allocation2], %s754_s27 }
  0x24   : > { %1315 = sst [smem:[#allocation18_spill]] %s1197_s30  ;;  %s225_s10 = sshll.u32 %s223_s7, 4  ;;  %s226_s10 = int_to_ptr.hbm [resolvable:$true] %s225_s10 }
  0x25   : > { %s227_s8 = sshll.u32 %s210_s11, 4  ;;  %p779_p2 = pnand %p791_p3, %p1182_p5  ;;  %s228_s8 = int_to_ptr.vmem [resolvable:$true] %s227_s8 }
  0x26   : > { %s237_s9 = sand.u32 1, %s1073_s20   ;;  %s728_s2 = sshll.u32 %s206_s26, 3 }
  0x27   : > { %s207_s3 = scalar_lea.sflag [#allocation3], %s206_s26  ;;  %s1316_s25 = smov 8  }
  0x28   : > { %s1317_s12 = smov 128   ;;  %s729_s13 = sshll.u32 %s1069_s19, 3 }
  0x29   : > { %781 = dma.hbm_to_vmem [thread:$0]  (!%p779_p2), %s226_s10, 384, %s228_s8, %s207_s3, %s1317_s12, %s1317_s12, %s1316_s25  }
  0x2a   : > { %s241_s30 = scalar_lea.vmem [#allocation5], %s728_s2  ;;  %s246_s27 = scalar_lea.hbm %s1296_s1, %s729_s13 }
  0x2b   : > { %s250_s17 = sshll.u32 %s241_s30, 4  ;;  %s248_s6 = sshll.u32 %s246_s27, 4  ;;  %s251_s17 = int_to_ptr.vmem [resolvable:$true] %s250_s17  ;;  %s249_s6 = int_to_ptr.hbm [resolvable:$true] %s248_s6 }
  0x2c   : > { %s238_s14 = scalar_lea.sflag [#allocation6], %s237_s9  ;;  %259 = sbr.rel (%p1159_p8) target bundleno = 518 (0x206), region = 36 }
  0x2d   : > { %784 = dma.hbm_to_vmem [thread:$0]  (!%p779_p2), %s249_s6, 128, %s251_s17, %s238_s14  }
  0x2e   : > { %s1217_s26 = sand.u32 (!%p1159_p8), 1, %s1057_s16  }
  0x2f   : > { %s755_s2 = smul.u32 (!%p1159_p8), 24, %s1217_s26  ;;  %s262_s3 = scalar_lea.sflag (!%p1159_p8), [#allocation3], %s1217_s26 }
  0x31   : > { %s1223_s8 = scalar_lea.vmem [#allocation2], %s755_s2 }
  0x32   : > { %1032 = dma.done.wait (%p1146_p4), %s262_s3, 384  }
  0x33   : > { %1034 = vsyncadd (%p1146_p4), %s262_s3, 4294966912  ;;  %s271_s17 = sand.u32 1, %s1137_s21   ;;  %s731_s28 = sshll.u32 %s1217_s26, 3 }
  0x34   : > { %s272_s9 = scalar_lea.sflag [#allocation6], %s271_s17  ;;  %s1231_s12 = scalar_lea.vmem [#allocation5], %s731_s28 }
  0x35   : > { %1036 = dma.done.wait (%p1146_p4), %s272_s9, 128  }
  0x36   : > { %1038 = vsyncadd (%p1146_p4), %s272_s9, 4294967168 }
  0x37   : > { %1040 = dma.done.wait (%p59_p1), [#allocation6], 6144  }
  0x38   : > { %1042 = vsyncadd (%p59_p1), [#allocation6], 4294961152 }
  0x39   : > { %1044 = dma.done.wait (%p59_p1), [#allocation9], 64  }
  0x3a   : > { %1046 = vsyncadd (%p59_p1), [#allocation9], 4294967232  ;;  %v442_v0 = vld [vmem:[#allocation7 + $0x178] sm:$0xff]  ;;  %v441_v1 = vld [vmem:[#allocation7 + $0x170] sm:$0xff]  ;;  %vm443_vm0 = vcmask 1045504   ;;  %vm363_vm1 = vcmask 1046528  }
  0x3b   : > { %v358_v2 = vld [vmem:[#allocation7 + $0xf8] sm:$0xff]  ;;  %454 = vmatpush.msra.mxu2 %v442_v0  ;;  %v357_v4 = vld [vmem:[#allocation7 + $0xf0] sm:$0xff]  ;;  %v440_v5 = vld [vmem:[#allocation7 + $0x168] sm:$0xff]  ;;  %s315_s21 = scalar_lea.vmem [#allocation10], %s755_s2  ;;  %s756_s23 = smul.u32 24, %s1065_s18 }
  0x3c   : > { %374 = vmatpush.msra.mxu0 %v358_v2  ;;  %v341_v3 = vld [vmem:[#allocation7 + $0x78] sm:$0xff]  ;;  %738 = vmatpush.msra.mxu3 %v358_v2  ;;  %v340_v6 = vld [vmem:[#allocation7 + $0x70] sm:$0xff]  ;;  %v356_v7 = vld [vmem:[#allocation7 + $0xe8] sm:$0xff]  ;;  %s587_s11 = sshll.u32 %s315_s21, 4  ;;  %s573_s18 = scalar_lea.sflag [#allocation4], %s1217_s26  ;;  %s588_s11 = int_to_ptr.vmem [resolvable:$true] %s587_s11 }
  0x3d   : > { %400 = vmatpush.msra.mxu1 %v341_v3  ;;  %455 = vmatpush.msra.mxu2 %v441_v1  ;;  %v339_v8 = vld [vmem:[#allocation7 + $0x68] sm:$0xff]  ;;  %v439_v9 = vld [vmem:[#allocation7 + $0x160] sm:$0xff]  ;;  %v438_v12 = vld [vmem:[#allocation7 + $0x158] sm:$0xff]  ;;  %s586_s10 = scalar_lea.hbm %s1299_s4, %s756_s23  ;;  %s999_s6 = scalar_lea.hbm %s1299_s4, 48 }
  0x3e   : > { %375 = vmatpush.msra.mxu0 %v357_v4  ;;  %739 = vmatpush.msra.mxu3 %v357_v4  ;;  %v355_v10 = vld [vmem:[#allocation7 + $0xe0] sm:$0xff]  ;;  %v354_v13 = vld [vmem:[#allocation7 + $0xd8] sm:$0xff]  ;;  %v437_v15 = vld [vmem:[#allocation7 + $0x150] sm:$0xff]  ;;  %s589_s25 = sshll.u32 %s586_s10, 4  ;;  %s590_s25 = int_to_ptr.hbm [resolvable:$true] %s589_s25 }
  0x3f   : > { %401 = vmatpush.msra.mxu1 %v340_v6  ;;  %456 = vmatpush.msra.mxu2 %v440_v5  ;;  %v338_v11 = vld [vmem:[#allocation7 + $0x60] sm:$0xff]  ;;  %v337_v14 = vld [vmem:[#allocation7 + $0x58] sm:$0xff]  ;;  %v353_v16 = vld [vmem:[#allocation7 + $0xd0] sm:$0xff]  ;;  %s993_s13 = sshra.s32 %s590_s25, 4  ;;  %s994_s13 = int_to_ptr.hbm [resolvable:$true] %s993_s13 }
  0x40   : > { %376 = vmatpush.msra.mxu0 %v356_v7  ;;  %740 = vmatpush.msra.mxu3 %v356_v7  ;;  %v336_v17 = vld [vmem:[#allocation7 + $0x50] sm:$0xff]  ;;  %v436_v18 = vld [vmem:[#allocation7 + $0x148] sm:$0xff]  ;;  %v435_v21 = vld [vmem:[#allocation7 + $0x140] sm:$0xff]  ;;  %s995_s5 = scalar_lea.hbm %s994_s13, 24  ;;  %p1000_p10 = scmp.lt.s32.totalorder %s994_s13, %s1299_s4 }
  0x41   : > { %402 = vmatpush.msra.mxu1 %v339_v8  ;;  %457 = vmatpush.msra.mxu2 %v439_v9  ;;  %v352_v19 = vld [vmem:[#allocation7 + $0xc8] sm:$0xff]  ;;  %v351_v22 = vld [vmem:[#allocation7 + $0xc0] sm:$0xff]  ;;  %v434_v24 = vld [vmem:[#allocation7 + $0x138] sm:$0xff]  ;;  %p996_p1 = scmp.ne.s32.totalorder %s994_s13, %s995_s5  ;;  %p1001_p12 = scmp.lt.s32.totalorder %s999_s6, %s995_s5 }
  0x42   : > { %377 = vmatpush.msra.mxu0 %v355_v10  ;;  %741 = vmatpush.msra.mxu3 %v355_v10  ;;  %v335_v20 = vld [vmem:[#allocation7 + $0x48] sm:$0xff]  ;;  %v334_v23 = vld [vmem:[#allocation7 + $0x40] sm:$0xff]  ;;  %v350_v25 = vld [vmem:[#allocation7 + $0xb8] sm:$0xff] }
  0x43   : > { %403 = vmatpush.msra.mxu1 %v338_v11  ;;  %458 = vmatpush.msra.mxu2 %v438_v12  ;;  %v333_v26 = vld [vmem:[#allocation7 + $0x38] sm:$0xff]  ;;  %v433_v27 = vld [vmem:[#allocation7 + $0x130] sm:$0xff]  ;;  %v432_v29 = vld [vmem:[#allocation7 + $0x128] sm:$0xff]  ;;  %p997_p4 = pnand %p996_p1, %p1188_p7  ;;  %p1002_p13 = por %p1001_p12, %p1000_p10 }
  0x44   : > { %378 = vmatpush.msra.mxu0 %v354_v13  ;;  %742 = vmatpush.msra.mxu3 %v354_v13  ;;  %v349_v28 = vld [vmem:[#allocation7 + $0xb0] sm:$0xff]  ;;  %v348_v31 = vld [vmem:[#allocation7 + $0xa8] sm:$0xff]  ;;  %v431_v33 = vld [vmem:[#allocation7 + $0x120] sm:$0xff] }
  0x45   : > { %404 = vmatpush.msra.mxu1 %v337_v14  ;;  %459 = vmatpush.msra.mxu2 %v437_v15  ;;  %v332_v30 = vld [vmem:[#allocation7 + $0x30] sm:$0xff]  ;;  %v331_v32 = vld [vmem:[#allocation7 + $0x28] sm:$0xff]  ;;  %v347_v34 = vld [vmem:[#allocation7 + $0xa0] sm:$0xff]  ;;  %p998_p8 = pneg %p997_p4 }
  0x46   : > { %379 = vmatpush.msra.mxu0 %v353_v16  ;;  %743 = vmatpush.msra.mxu3 %v353_v16  ;;  %v430_v35 = vld [vmem:[#allocation7 + $0x118] sm:$0xff]  ;;  %v330_v36 = vld [vmem:[#allocation7 + $0x20] sm:$0xff]  ;;  %v429_v41 = vld [vmem:[#allocation7 + $0x110] sm:$0xff] }
  0x47   : > { %405 = vmatpush.msra.mxu1 %v336_v17  ;;  %460 = vmatpush.msra.mxu2 %v436_v18  ;;  %v346_v37 = vld [vmem:[#allocation7 + $0x98] sm:$0xff]  ;;  %v323_v39 = vld [vmem:[%s1223_s8 + $0x8] sm:$0xff]  ;;  %v345_v42 = vld [vmem:[#allocation7 + $0x90] sm:$0xff]  ;;  %p1003_p0 = pnand %p1002_p13, %p998_p8 }
  0x48   : > { %380 = vmatpush.msra.mxu0 %v352_v19  ;;  %744 = vmatpush.msra.mxu3 %v352_v19  ;;  %v322_v38 = vld [vmem:[%s1223_s8] sm:$0xff]  ;;  %v328_v43 = vld [vmem:[#allocation7 + $0x10] sm:$0xff]  ;;  %v445_v45 = vrot.slane %v323_v39, 2  ;;  %v428_v47 = vld [vmem:[#allocation7 + $0x108] sm:$0xff]  ;;  %v365_v50 = vrot.slane %v323_v39, 1 }
  0x49   : > { %406 = vmatpush.msra.mxu1 %v335_v20  ;;  %461 = vmatpush.msra.mxu2 %v435_v21  ;;  %v329_v40 = vld [vmem:[#allocation7 + $0x18] sm:$0xff]  ;;  %v444_v44 = vrot.slane %v322_v38, 2  ;;  %v324_v46 = vld [vmem:[%s1223_s8 + $0x10] sm:$0xff]  ;;  %v364_v49 = vrot.slane %v322_v38, 1  ;;  %v427_v52 = vld [vmem:[#allocation7 + $0x100] sm:$0xff] }
  0x4a   : > { %381 = vmatpush.msra.mxu0 %v351_v22  ;;  %745 = vmatpush.msra.mxu3 %v351_v22  ;;  %v344_v48 = vld [vmem:[#allocation7 + $0x88] sm:$0xff]  ;;  %v343_v53 = vld [vmem:[#allocation7 + $0x80] sm:$0xff]  ;;  %v367_v54 = vrot.slane %v324_v46, 1  ;;  %v447_v59 = vrot.slane %v324_v46, 2  ;;  %v325_v60 = vld [vmem:[%s1231_s12] sm:$0xff] }
  0x4b   : > { %407 = vmatpush.msra.mxu1 %v334_v23  ;;  %462 = vmatpush.msra.mxu2 %v434_v24  ;;  %v327_v51 = vld [vmem:[#allocation7 + $0x8] sm:$0xff]  ;;  %v446_v55 = vsel %vm443_vm0, %v444_v44, %v445_v45  ;;  %v326_v56 = vld [vmem:[#allocation7] sm:$0xff]  ;;  %v366_v57 = vsel %vm363_vm1, %v364_v49, %v365_v50  ;;  %v369_v61 = vrot.slane %v325_v60, 1  ;;  %v449_v0 = vrot.slane %v325_v60, 2 }
  0x4c   : > { %382 = vmatpush.msra.mxu0 %v350_v25  ;;  %746 = vmatpush.msra.mxu3 %v350_v25  ;;  %v368_v58 = vsel %vm363_vm1, %v365_v50, %v367_v54  ;;  %v448_v62 = vsel %vm443_vm0, %v445_v45, %v447_v59  ;;  %v849_v5 = vld [vmem:[#allocation8] ss:$0 sm:$0xff]  ;;  %v850_v11 = vld [vmem:[#allocation8 + $0x3] ss:$0 sm:$0xff]  ;;  %v851_v60 = vld [vmem:[#allocation8 + $0x1] ss:$0 sm:$0xff] }
  0x4d   : > { %408 = vmatpush.msra.mxu1 %v333_v26  ;;  %463 = vmatpush.msra.mxu2 %v433_v27  ;;  %v370_v63 = vsel %vm363_vm1, %v367_v54, %v369_v61  ;;  %v450_v1 = vsel %vm443_vm0, %v447_v59, %v449_v0 }
  0x4e   : > { %383 = vmatpush.msra.mxu0 %v349_v28  ;;  %747 = vmatpush.msra.mxu3 %v349_v28 }
  0x4f   : > { %409 = vmatpush.msra.mxu1 %v332_v30  ;;  %464 = vmatpush.msra.mxu2 %v432_v29 }
  0x50   : > { %384 = vmatpush.msra.mxu0 %v348_v31  ;;  %748 = vmatpush.msra.mxu3 %v348_v31 }
  0x51   : > { %410 = vmatpush.msra.mxu1 %v331_v32  ;;  %465 = vmatpush.msra.mxu2 %v431_v33 }
  0x52   : > { %385 = vmatpush.msra.mxu0 %v347_v34  ;;  %749 = vmatpush.msra.mxu3 %v347_v34 }
  0x53   : > { %411 = vmatpush.msra.mxu1 %v330_v36  ;;  %466 = vmatpush.msra.mxu2 %v430_v35 }
  0x54   : > { %386 = vmatpush.msra.mxu0 %v346_v37  ;;  %750 = vmatpush.msra.mxu3 %v346_v37 }
  0x55   : > { %412 = vmatpush.msra.mxu1 %v329_v40  ;;  %467 = vmatpush.msra.mxu2 %v429_v41 }
  0x56   : > { %387 = vmatpush.msra.mxu0 %v345_v42  ;;  %751 = vmatpush.msra.mxu3 %v345_v42 }
  0x57   : > { %413 = vmatpush.msra.mxu1 %v328_v43  ;;  %468 = vmatpush.msra.mxu2 %v428_v47 }
  0x58   : > { %388 = vmatpush.msra.mxu0 %v344_v48  ;;  %752 = vmatpush.msra.mxu3 %v344_v48 }
  0x59   : > { %414 = vmatpush.msra.mxu1 %v327_v51  ;;  %469 = vmatpush.msra.mxu2 %v427_v52 }
  0x5a   : > { %389 = vmatpush.msra.mxu0 %v343_v53  ;;  %470 = vmatmul.f32.vlgmr.msra.gmra.mxu2 %v446_v55 }
  0x5b   : > { %415 = vmatpush.msra.mxu1 %v326_v56  ;;  %390 = vmatmul.f32.vlgmr.msra.gmra.mxu0 %v366_v57 }
  0x5c   : > { %416 = vmatmul.f32.vlgmr.msra.gmra.mxu1 %v322_v38  ;;  %753 = vmatpush.msra.mxu3 %v343_v53 }
  0x5d   : > { %393 = vmatmul.f32.vlgmr.msra.gmra.mxu3 %v368_v58 }
  0x62   : > { %473 = vmatmul.f32.gmra.mxu2 %v448_v62 }
  0x64   : > { %419 = vmatmul.f32.gmra.mxu1 %v323_v39 }
  0x65   : > { %396 = vmatmul.f32.gmra.mxu3 %v370_v63  ;;  %v852_v63 = vld [vmem:[#allocation8 + $0x2] ss:$0 sm:$0xff] }
  0x6a   : > { %476 = vmatmul.f32.gmra.mxu2 %v450_v1 }
  0x6c   : > { %422 = vmatmul.f32.gmra.mxu1 %v324_v46 }
  0xd8   : > { %v391_v2 = vpop.f32.mrf.mxu0 }
  0xd9   : > { %v417_v3 = vpop.f32.mrf.mxu1 }
  0xda   : > { %v418_v4 = vadd.f32 %v417_v3, %v391_v2 }
  0xdd   : > { %v471_v6 = vpop.f32.mrf.mxu2 }
  0xde   : > { %v480_v7 = vadd.f32 %v471_v6, %v418_v4 }
  0xe0   : > { %v488_v8 = vadd.f32 %v849_v5, %v480_v7  ;;  %v394_v9 = vpop.f32.mrf.mxu3 }
  0xe1   : > { %v420_v10 = vpop.f32.mrf.mxu1 }
  0xe2   : > { %v491_v12 = vmax.f32 %v488_v8, 0.0  ;;  %v421_v13 = vadd.f32 %v420_v10, %v394_v9 }
  0xe4   : > { %v495_v14 = vmul.f32 %v850_v11, %v491_v12 }
  0xe5   : > { %v474_v15 = vpop.f32.mrf.mxu2 }
  0xe6   : > { %v481_v16 = vadd.f32 %v474_v15, %v421_v13  ;;  %498 = vadd.xlane.f32.xlu0 %v495_v14 }
  0xe8   : > { %v489_v17 = vadd.f32 %v849_v5, %v481_v16  ;;  %v397_v18 = vpop.f32.mrf.mxu3 }
  0xe9   : > { %v423_v19 = vpop.f32.mrf.mxu1 }
  0xea   : > { %v492_v20 = vmax.f32 %v489_v17, 0.0  ;;  %v424_v21 = vadd.f32 %v423_v19, %v397_v18 }
  0xec   : > { %v496_v22 = vmul.f32 %v850_v11, %v492_v20 }
  0xed   : > { %v477_v23 = vpop.f32.mrf.mxu2 }
  0xee   : > { %v482_v24 = vadd.f32 %v477_v23, %v424_v21  ;;  %500 = vadd.xlane.f32.xlu0 %v496_v22 }
  0xf0   : > { %v490_v25 = vadd.f32 %v849_v5, %v482_v24 }
  0xf2   : > { %v493_v26 = vmax.f32 %v490_v25, 0.0 }
  0xf4   : > { %v497_v27 = vmul.f32 %v850_v11, %v493_v26 }
  0xf6   : > { %502 = vadd.xlane.f32.xlu1 %v497_v27 }
 0x159   : > { %v499_v28 = vpop.xlane.xlu0 %498 }
 0x15a   : > { %v504_v29 = vmul.f32 0.03125, %v499_v28 }
 0x15c   : > { %v507_v30 = vsub.f32 %v495_v14, %v504_v29 }
 0x15e   : > { %v510_v31 = vmul.f32 %v850_v11, %v507_v30 }
 0x160   : > { %v513_v32 = vmul.f32 %v510_v31, %v510_v31 }
 0x161   : > { %v501_v33 = vpop.xlane.xlu0 %500 }
 0x162   : > { %v505_v34 = vmul.f32 0.03125, %v501_v33  ;;  %516 = vadd.xlane.f32.xlu1 %v513_v32 }
 0x164   : > { %v508_v35 = vsub.f32 %v496_v22, %v505_v34 }
 0x166   : > { %v511_v36 = vmul.f32 %v850_v11, %v508_v35 }
 0x168   : > { %v514_v37 = vmul.f32 %v511_v36, %v511_v36 }
 0x169   : > { %v503_v38 = vpop.xlane.xlu1 %502 }
 0x16a   : > { %v506_v39 = vmul.f32 0.03125, %v503_v38  ;;  %518 = vadd.xlane.f32.xlu2 %v514_v37 }
 0x16c   : > { %v509_v40 = vsub.f32 %v497_v27, %v506_v39 }
 0x16e   : > { %v512_v41 = vmul.f32 %v850_v11, %v509_v40 }
 0x170   : > { %v515_v42 = vmul.f32 %v512_v41, %v512_v41 }
 0x172   : > { %520 = vadd.xlane.f32.xlu2 %v515_v42 }
 0x1d5   : > { %v517_v43 = vpop.xlane.xlu1 %516 }
 0x1d6   : > { %v522_v44 = vmul.f32 0.03125, %v517_v43 }
 0x1d8   : > { %v525_v45 = vadd.f32 1e-05, %v522_v44 }
 0x1da   : > { %853 = vrsqrt.f32 %v525_v45  ;;  %vm534_vm3 = vweird.f32 %v525_v45 }
 0x1dd   : > { %v519_v46 = vpop.xlane.xlu2 %518 }
 0x1de   : > { %v523_v47 = vmul.f32 0.03125, %v519_v46 }
 0x1e0   : > { %v854_v48 = vpop.eup %853  ;;  %v526_v49 = vadd.f32 1e-05, %v523_v47 }
 0x1e1   : > { %v529_v50 = vmul.f32 %v854_v48, %v525_v45  ;;  %vm535_vm2 = vweird.f32 %v854_v48 }
 0x1e2   : > { %855 = vrsqrt.f32 %v526_v49  ;;  %vm536_vm4 = vmor %vm534_vm3, %vm535_vm2  ;;  %vm544_vm6 = vweird.f32 %v526_v49 }
 0x1e3   : > { %v530_v51 = vmul.f32 %v854_v48, %v529_v50 }
 0x1e5   : > { %v531_v52 = vmul.f32 0.5, %v530_v51  ;;  %v521_v53 = vpop.xlane.xlu2 %520 }
 0x1e6   : > { %v524_v54 = vmul.f32 0.03125, %v521_v53 }
 0x1e7   : > { %v532_v55 = vsub.f32 1.5, %v531_v52 }
 0x1e8   : > { %v856_v56 = vpop.eup %855  ;;  %v527_v57 = vadd.f32 1e-05, %v524_v54 }
 0x1e9   : > { %v533_v58 = vmul.f32 %v854_v48, %v532_v55  ;;  %v539_v59 = vmul.f32 %v856_v56, %v526_v49  ;;  %vm545_vm5 = vweird.f32 %v856_v56 }
 0x1ea   : > { %857 = vrsqrt.f32 %v527_v57  ;;  %vm546_vm7 = vmor %vm544_vm6, %vm545_vm5  ;;  %vm554_vm9 = vweird.f32 %v527_v57 }
 0x1eb   : > { %v537_v61 = vsel %vm536_vm4, %v854_v48, %v533_v58  ;;  %v540_v62 = vmul.f32 %v856_v56, %v539_v59 }
 0x1ec   : > { %v558_v0 = vmul.f32 %v537_v61, %v510_v31 }
 0x1ed   : > { %v541_v1 = vmul.f32 0.5, %v540_v62 }
 0x1ee   : > { %v562_v2 = vmul.f32 %v851_v60, %v558_v0 }
 0x1ef   : > { %v542_v3 = vsub.f32 1.5, %v541_v1 }
 0x1f0   : > { %v858_v4 = vpop.eup %857  ;;  %v566_v5 = vadd.f32 %v852_v63, %v562_v2 }
 0x1f1   : > { %v543_v6 = vmul.f32 %v856_v56, %v542_v3  ;;  %v549_v7 = vmul.f32 %v858_v4, %v527_v57  ;;  %vm555_vm8 = vweird.f32 %v858_v4 }
 0x1f2   : > { %569 = vst [vmem:[%s315_s21] sm:$0xff] %v566_v5  ;;  %vm556_vm10 = vmor %vm554_vm9, %vm555_vm8 }
 0x1f3   : > { %v547_v8 = vsel %vm546_vm7, %v856_v56, %v543_v6  ;;  %v550_v9 = vmul.f32 %v858_v4, %v549_v7 }
 0x1f4   : > { %v559_v10 = vmul.f32 %v547_v8, %v511_v36 }
 0x1f5   : > { %v551_v11 = vmul.f32 0.5, %v550_v9 }
 0x1f6   : > { %v563_v12 = vmul.f32 %v851_v60, %v559_v10 }
 0x1f7   : > { %v552_v13 = vsub.f32 1.5, %v551_v11 }
 0x1f8   : > { %v567_v14 = vadd.f32 %v852_v63, %v563_v12 }
 0x1f9   : > { %v553_v15 = vmul.f32 %v858_v4, %v552_v13 }
 0x1fa   : > { %570 = vst [vmem:[%s315_s21 + $0x8] sm:$0xff] %v567_v14 }
 0x1fb   : > { %v557_v16 = vsel %vm556_vm10, %v858_v4, %v553_v15 }
 0x1fc   : > { %v560_v17 = vmul.f32 %v557_v16, %v512_v41 }
 0x1fe   : > { %v564_v18 = vmul.f32 %v851_v60, %v560_v17 }
 0x200   : > { %v568_v19 = vadd.f32 %v852_v63, %v564_v18 }
 0x202   : > { %571 = vst [vmem:[%s315_s21 + $0x10] sm:$0xff] %v568_v19 }
 0x203   : > { %1006 = shalt.err (!%p1003_p0)
}
 0x204   : > { %s1079_s26 = smov 128   ;;  %s1080_s3 = smov 8  }
 0x205   : > { %769 = dma.vmem_to_hbm [thread:$0]  (%p1188_p7), %s588_s11, 384, %s590_s25, %s573_s18, %s1079_s26, %s1079_s26, %s1080_s3  }
 0x206 PF: > { %s604_s8 = sand.u32 1, %s1053_s15   ;;  %p786_p3 = pnand %p725_p11, %p1151_p6 }
 0x207   : > { %s605_s17 = scalar_lea.sflag [#allocation4], %s604_s8 }
 0x208   : > { %p787_p5 = pneg %p786_p3 }
 0x20a   : > { %1048 = dma.done.wait (%p787_p5), %s605_s17, 384  }
 0x20b   : > { %1050 = vsyncadd (%p787_p5), %s605_s17, 4294966912  ;;  %s24_s20 = sadd.s32 1, %s1073_s20   ;;  %s1318_s28 = sld [smem:[#allocation16_spill]] }
 0x20c   : > { %p21_p9 = scmp.ge.s32.totalorder %s24_s20, 4   ;;  %s1319_s17 = sld [smem:[#allocation18_spill]] }
 0x20d   : > { %s1320_s22 = sld [smem:[#allocation17_spill]]  ;;  %s1321_s15 = smov %s1057_s16 }
 0x20e   : > { %s1323_s18 = smov %s1069_s19 }
 0x20f   :  { %23 = sbr.rel (!%p21_p9) target bundleno = 12 (0xc), region = 104 }
 0x211   : > { %s1322_s16 = smov %s1318_s28 }
 0x213   : > { %s1324_s19 = smov %s1320_s22 }
 0x214   :  { %611 = vsyncpa [#allocation3], 1 }
 0x215   :  { %613 = vsyncpa [#allocation3 + $0x1], 1 }
 0x216   :  { %614 = vsyncpa [#allocation6], 1 }
 0x217   :  { %616 = vsyncpa [#allocation6 + $0x1], 1 }
 0x218   :  { %617 = vsyncpa [#allocation9], 1 }
 0x219   :  { %618 = vsyncpa [#allocation4], 1 }
 0x21a   :  { %620 = vsyncpa [#allocation4 + $0x1], 1 }

</bundles_post_ra>
